<compile_context>
chip_gen: v6e
topology: v6e:2x2x1
jax: 0.10.0
libtpu: 0.0.40
codegen_flags: <defaults>
</compile_context>

<pallas_src>
import jax
import jax.numpy as jnp
from jax.experimental import pallas as pl
from jax.experimental.pallas import tpu as pltpu


def _exo_encoder_kernel(x_ref, w_ref, b_ref, o_ref):
    """x_ref: (TB, L, V); w_ref: (L, E); b_ref: (1, E); o_ref: (TB, V, E)."""
    w = w_ref[...]                       # VMEM-resident across the whole grid
    b = b_ref[...].astype(jnp.float32)   # (1, E), broadcasts over V
    tb = x_ref.shape[0]
    for t in range(tb):                  # short static unrolled loop (<= 16)
        x_t = x_ref[t]                   # (L, V)
        # out[v, e] = sum_l x[l, v] * w[l, e]
        # Contracting lhs dim 0 == the permute(0, 2, 1): the MXU absorbs the
        # lhs transpose for free, so no data movement is spent on it.
        y = jax.lax.dot_general(
            x_t, w,
            dimension_numbers=(((0,), (0,)), ((), ())),
            preferred_element_type=jnp.float32,
        )                                # (V, E), f32 accumulate
        o_ref[t] = (y + b).astype(o_ref.dtype)


def _round_up(x, m):
    return ((x + m - 1) // m) * m


def _pick_batch_tile(B, L, V, E, x_itemsize, o_itemsize,
                     vmem_budget_bytes, max_tile=16):
    # Per-batch-row VMEM bytes in the native (8, 128) tiled layout (the narrow
    # n_vars axis is lane-padded to 128 in VMEM; HBM traffic is unaffected --
    # this only bounds the tile size).
    x_row = _round_up(L, 8) * 128 * x_itemsize
    o_row = _round_up(V, 8) * _round_up(E, 128) * o_itemsize
    per_row = 2 * (x_row + o_row)        # x2: double-buffered pipeline
    tb = max(1, vmem_budget_bytes // per_row)
    return int(min(tb, B, max_tile))


def exogenous_encoder(inputs, weight, bias, *,
                      batch_tile=None,
                      vmem_budget_bytes=16 * 1024 * 1024):
    """Forward pass of ExogenousEncoder.

    inputs: (B, input_len, n_vars); weight: (E, input_len); bias: (E,)
    returns (B, n_vars, E) in the input dtype (f32 accumulation inside).
    """
    B, L, V = inputs.shape
    E = weight.shape[0]

    # One-time O(E*L) parameter reshapes (tiny, outside the kernel hot path);
    # the big `inputs` tensor is never touched by the wrapper.
    w_t = jnp.transpose(weight, (1, 0)).astype(inputs.dtype)   # (L, E)
    b2 = bias.reshape(1, E).astype(jnp.float32)                # f32 bias add

    out_dtype = inputs.dtype
    if batch_tile is None:
        batch_tile = _pick_batch_tile(
            B, L, V, E,
            jnp.dtype(inputs.dtype).itemsize,
            jnp.dtype(out_dtype).itemsize,
            vmem_budget_bytes)
    tb = int(max(1, min(batch_tile, B)))
    nb = pl.cdiv(B, tb)

    out = pl.pallas_call(
        _exo_encoder_kernel,
        out_shape=jax.ShapeDtypeStruct((B, V, E), out_dtype),
        grid=(nb,),
        in_specs=[
            # (TB, L, V) straight from the un-permuted input; taking full L
            # and V per block satisfies the (8, 128) rule via the full-dim
            # exemption, and the HBM read per block is contiguous.
            pl.BlockSpec((tb, L, V), lambda i: (i, 0, 0)),
            # Weight / bias: constant index_map -> resident, no re-DMA.
            pl.BlockSpec((L, E), lambda i: (0, 0)),
            pl.BlockSpec((1, E), lambda i: (0, 0)),
        ],
        out_specs=pl.BlockSpec((tb, V, E), lambda i: (i, 0, 0)),
        compiler_params=pltpu.CompilerParams(
            # Batch tiles are independent -> shard across both TCs on v7x;
            # neutral on v5e/v6e.
            dimension_semantics=("parallel",),
            vmem_limit_bytes=64 * 1024 * 1024,
        ),
    )(inputs, w_t, b2)

    return out


if __name__ == "__main__":
    # Small shapes consistent with the module.
    B, input_len, n_vars, embedding_dim = 2, 8, 4, 32

    key = jax.random.PRNGKey(0)
    k_x, k_w, k_b = jax.random.split(key, 3)

    inputs = jax.random.normal(k_x, (B, input_len, n_vars), dtype=jnp.float32)
    # Deterministic synthetic nn.Linear(input_len, embedding_dim) parameters.
    weight = jax.random.normal(k_w, (embedding_dim, input_len), dtype=jnp.float32) * 0.1
    bias = jax.random.normal(k_b, (embedding_dim,), dtype=jnp.float32) * 0.1

    # Pure-JAX reference of the PyTorch forward (permute + Linear over input_len).
    ref = jnp.einsum("blv,el->bve", inputs, weight) + bias

    # f32 path: matches the f32 reference tightly.
    emb = jax.block_until_ready(exogenous_encoder(inputs, weight, bias))
    assert emb.shape == (B, n_vars, embedding_dim)
    assert jnp.allclose(emb, ref, atol=1e-5, rtol=1e-5)

    # bf16 path: upstream provides bf16 activations/weights -> half the HBM
    # bytes of the dominant streams; accumulation stays f32 inside the kernel.
    emb_bf16 = jax.block_until_ready(
        exogenous_encoder(inputs.astype(jnp.bfloat16),
                          weight.astype(jnp.bfloat16),
                          bias))
    assert emb_bf16.shape == (B, n_vars, embedding_dim)
    assert jnp.allclose(emb_bf16.astype(jnp.float32), ref, atol=1e-1, rtol=1e-1)

    print("KERNEL_OK")
</pallas_src>

<mosaic_0001>
module attributes {stable_mosaic.version = 11 : i64} {
  func.func @_exo_encoder_kernel(%arg0: i32, %arg1: memref<2x8x4xf32, #tpu.memory_space<vmem>>, %arg2: memref<8x32xf32, #tpu.memory_space<vmem>>, %arg3: memref<1x32xf32, #tpu.memory_space<vmem>>, %arg4: memref<2x4x32xf32, #tpu.memory_space<vmem>>) attributes {dimension_semantics = [#tpu.dimension_semantics<parallel>], iteration_bounds = array<i64: 1>, scalar_prefetch = 0 : i64, scratch_operands = 0 : i64, tpu.core_type = #tpu.core_type<tc>, window_params = [{transform_indices = @transform_0, window_bounds = array<i64: 2, 8, 4>}, {pipeline_mode = #tpu.pipeline_mode<synchronous>, transform_indices = @transform_1, window_bounds = array<i64: 8, 32>}, {pipeline_mode = #tpu.pipeline_mode<synchronous>, transform_indices = @transform_2, window_bounds = array<i64: 1, 32>}, {transform_indices = @transform_3, window_bounds = array<i64: 2, 4, 32>}]} {
    %c0 = arith.constant 0 : index
    %c0_0 = arith.constant 0 : index
    %0 = vector.load %arg2[%c0, %c0_0] : memref<8x32xf32, #tpu.memory_space<vmem>>, vector<8x32xf32>
    %c0_1 = arith.constant 0 : index
    %c0_2 = arith.constant 0 : index
    %1 = vector.load %arg3[%c0_1, %c0_2] : memref<1x32xf32, #tpu.memory_space<vmem>>, vector<1x32xf32>
    %c0_3 = arith.constant 0 : index
    %c0_4 = arith.constant 0 : index
    %c0_5 = arith.constant 0 : index
    %2 = vector.load %arg1[%c0_3, %c0_4, %c0_5] : memref<2x8x4xf32, #tpu.memory_space<vmem>>, vector<1x8x4xf32>
    %3 = vector.shape_cast %2 : vector<1x8x4xf32> to vector<8x4xf32>
    %cst = arith.constant dense<0.000000e+00> : vector<4x32xf32>
    %4 = tpu.matmul %3, %0, %cst {dimension_numbers = #tpu.dot_dimension_numbers<[0], [0], [1], [1], [0, 1, 1, 1], [], []>} : vector<8x4xf32>, vector<8x32xf32>, vector<4x32xf32> -> vector<4x32xf32>
    %5 = vector.broadcast %1 : vector<1x32xf32> to vector<4x32xf32>
    %6 = arith.addf %4, %5 : vector<4x32xf32>
    %c0_6 = arith.constant 0 : index
    %c0_7 = arith.constant 0 : index
    %c0_8 = arith.constant 0 : index
    %7 = vector.load %arg4[%c0_6, %c0_7, %c0_8] : memref<2x4x32xf32, #tpu.memory_space<vmem>>, vector<1x4x32xf32>
    %8 = vector.shape_cast %7 : vector<1x4x32xf32> to vector<4x32xf32>
    %9 = vector.shape_cast %6 : vector<4x32xf32> to vector<1x4x32xf32>
    tpu.vector_store %arg4[%c0_6, %c0_7, %c0_8], %9 {strides = array<i32>} : memref<2x4x32xf32, #tpu.memory_space<vmem>>, vector<1x4x32xf32>,
    %c1 = arith.constant 1 : index
    %c0_9 = arith.constant 0 : index
    %c0_10 = arith.constant 0 : index
    %10 = vector.load %arg1[%c1, %c0_9, %c0_10] : memref<2x8x4xf32, #tpu.memory_space<vmem>>, vector<1x8x4xf32>
    %11 = vector.shape_cast %10 : vector<1x8x4xf32> to vector<8x4xf32>
    %cst_11 = arith.constant dense<0.000000e+00> : vector<4x32xf32>
    %12 = tpu.matmul %11, %0, %cst_11 {dimension_numbers = #tpu.dot_dimension_numbers<[0], [0], [1], [1], [0, 1, 1, 1], [], []>} : vector<8x4xf32>, vector<8x32xf32>, vector<4x32xf32> -> vector<4x32xf32>
    %13 = vector.broadcast %1 : vector<1x32xf32> to vector<4x32xf32>
    %14 = arith.addf %12, %13 : vector<4x32xf32>
    %c1_12 = arith.constant 1 : index
    %c0_13 = arith.constant 0 : index
    %c0_14 = arith.constant 0 : index
    %15 = vector.load %arg4[%c1_12, %c0_13, %c0_14] : memref<2x4x32xf32, #tpu.memory_space<vmem>>, vector<1x4x32xf32>
    %16 = vector.shape_cast %15 : vector<1x4x32xf32> to vector<4x32xf32>
    %17 = vector.shape_cast %14 : vector<4x32xf32> to vector<1x4x32xf32>
    tpu.vector_store %arg4[%c1_12, %c0_13, %c0_14], %17 {strides = array<i32>} : memref<2x4x32xf32, #tpu.memory_space<vmem>>, vector<1x4x32xf32>,
    return
  }
  func.func @transform_0(%arg0: i32) -> (i32, i32, i32) {
    %c0_i32 = arith.constant 0 : i32
    %c0_i32_0 = arith.constant 0 : i32
    %c0_i32_1 = arith.constant 0 : i32
    return %arg0, %c0_i32, %c0_i32_0 : i32, i32, i32
  }
  func.func @transform_1(%arg0: i32) -> (i32, i32) {
    %c0_i32 = arith.constant 0 : i32
    %c0_i32_0 = arith.constant 0 : i32
    %c0_i32_1 = arith.constant 0 : i32
    return %c0_i32, %c0_i32_0 : i32, i32
  }
  func.func @transform_2(%arg0: i32) -> (i32, i32) {
    %c0_i32 = arith.constant 0 : i32
    %c0_i32_0 = arith.constant 0 : i32
    %c0_i32_1 = arith.constant 0 : i32
    return %c0_i32, %c0_i32_0 : i32, i32
  }
  func.func @transform_3(%arg0: i32) -> (i32, i32, i32) {
    %c0_i32 = arith.constant 0 : i32
    %c0_i32_0 = arith.constant 0 : i32
    %c0_i32_1 = arith.constant 0 : i32
    return %arg0, %c0_i32, %c0_i32_0 : i32, i32, i32
  }
}

</mosaic_0001>

<bundles_post_ra>
// kernel: tpu_custom_call.1
= control target key start
LH: loop header
LB: loop body
LE: loop exit
PB: predicated region body
PF: predicated region fallthrough
CT: control target
= control target key end

     0   :  { %v302_v2 = vmov 0.0   ;;  %s342_s0 = inlined_call_operand.vmem [shape: f32[2,8,4], index: 0, kind: input, shape index: {}]   ;;  %s343_s1 = inlined_call_operand.vmem [shape: f32[8,32], index: 1, kind: input, shape index: {}]   ;;  %s344_s2 = inlined_call_operand.vmem [shape: f32[1,32], index: 2, kind: input, shape index: {}]   ;;  %s345_s3 = inlined_call_operand.hbm [shape: f32[2,4,32], index: 3, kind: output, shape index: {}]  }
   0x1   :  { %v17_v0 = vld [vmem:[%s342_s0] sm:$0xff]  ;;  %265 = vmatprep.subr.mxu0 %v302_v2 }
   0x2   :  { %v15_v1 = vld [vmem:[%s343_s1] sm:$0xff]  ;;  %24 = vxpose.xlu0.b32.start.end [1/1] (short) (narrow) %v17_v0, 8 }
   0x3   :  { %8 = vsyncpa [#allocation3], 0  ;;  %v259_v3 = vld [vmem:[%s342_s0 + $0x8] sm:$0xff]  ;;  %vm303_vm0 = vmmov 0   ;;  %266 = vmatpush3.msra.mxu0 %v15_v1  ;;  %270 = vmatprep.subr.mxu1 %v302_v2  ;;  %vm56_vm1 = vcmask 64512   ;;  %vm130_vm2 = vcmask 257024  }
   0x4   :  { %267 = vmatprep.mubr.msk.f32.mxu0 %vm303_vm0, %v302_v2  ;;  %272 = vmatprep.mubr.msk.f32.mxu1 %vm303_vm0, %v302_v2  ;;  %v257_v6 = vld [vmem:[%s344_s2] ss:$0 sm:$0xff]  ;;  %s304_s0 = smov [#allocation2]  }
   0x5   :  { %271 = vmatpush3.msra.mxu1 %v15_v1  ;;  %s246_s19 = sshll.u32 %s304_s0, 4  ;;  %s247_s19 = int_to_ptr.vmem [resolvable:$true] %s246_s19 }
   0x6   :  { %134 = vxpose.xlu0.b32.start.end [1/1] (short) (narrow) %v259_v3, 8  ;;  %s280_s20 = scalar_lea.vmem %s247_s19, 128  ;;  %p285_p1 = scmp.lt.s32.totalorder %s247_s19, %s247_s19 }
   0x7   :  { %p281_p0 = scmp.ne.s32.totalorder %s247_s19, %s280_s20  ;;  %p286_p2 = scmp.lt.s32.totalorder %s280_s20, %s280_s20 }
   0x9   :  { %p287_p3 = por %p286_p2, %p285_p1 }
   0xb   :  { %p288_p4 = pnand %p287_p3, %p281_p0 }
  0x7e   :  { %v40_v4 = vpop.trf.xlu0 }
  0x7f   :  { %268 = vmatmul.mubr.msk.f32.vlgmr.msra.gmra.mxu0 %vm56_vm1, %v40_v4 }
  0x82   :  { %v150_v5 = vpop.trf.xlu0 }
  0x83   :  { %273 = vmatmul.mubr.msk.f32.vlgmr.msra.gmra.mxu1 %vm56_vm1, %v150_v5 }
 0x13f   :  { %v126_v7 = vpop.f32.mrf.mxu0 }
 0x140   :  { %v127_v8 = vadd.f32 %v257_v6, %v126_v7 }
 0x141   :  { %v269_v9 = vpop.f32.mrf.mxu0 }
 0x142   :  { %131 = vst.msk [vmem:[#allocation2] sm:$0xf] %vm130_vm2, %v127_v8 }
 0x143   :  { %v235_v10 = vpop.f32.mrf.mxu1 }
 0x144   :  { %v236_v11 = vadd.f32 %v257_v6, %v235_v10 }
 0x145   :  { %v274_v12 = vpop.f32.mrf.mxu1 }
 0x146   :  { %240 = vst.msk [vmem:[#allocation2 + $0x4] sm:$0xf] %vm130_vm2, %v236_v11 }
 0x147   :  { %291 = shalt.err (!%p288_p4)
}
 0x148   :  { %s305_s2 = smov 64   ;;  %s306_s21 = smov 4  }
 0x149   :  { %252 = dma.vmem_to_hbm [thread:$0]  %s247_s19, 128, %s345_s3, [#allocation3], %s305_s2, %s305_s2, %s306_s21  }
 0x14a   :  { %300 = dma.done.wait [#allocation3], 128  }
 0x14b   :  { %301 = vsyncadd [#allocation3], 4294967168 }
 0x14c   :  { %256 = vsyncpa [#allocation3], 1 }

</bundles_post_ra>
